<compile_context>
chip_gen: v7x
topology: tpu7x:2x2x1
jax: 0.10.0
libtpu: 0.0.40
codegen_flags: <defaults>
</compile_context>

<pallas_src>
import functools

import numpy as np
import jax
import jax.numpy as jnp
from jax.experimental import pallas as pl
from jax.experimental.pallas import tpu as pltpu


def _cam_kernel(gamma_ref, x_ref, o_ref, *, matmul_dtype, approx_recip):
    # x_ref block: (Bt, C, HWp); gamma_ref: (1,) scalar in SMEM.
    x = x_ref[...].astype(jnp.float32)                 # residual copy (f32)
    xm = x.astype(matmul_dtype)                        # MXU operand (bf16 on prod path)

    # energy[b] = X[b] @ X[b]^T -- contraction over HW, no materialized transpose.
    energy = jnp.einsum("bcn,bdn->bcd", xm, xm,
                        preferred_element_type=jnp.float32)        # (Bt, C, C) f32

    # softmax(rowmax(e) - e) == softmax(-e); stabilize with rowmin:
    #   exp(-e - max(-e)) == exp(min(e) - e).  One XLU reduce instead of two.
    row_min = jnp.min(energy, axis=-1, keepdims=True)
    p = jnp.exp(row_min - energy)
    denom = jnp.sum(p, axis=-1, keepdims=True)
    attention = p * pl.reciprocal(denom, approx=approx_recip)      # (Bt, C, C)

    out = jnp.einsum("bcd,bdn->bcn", attention.astype(matmul_dtype), xm,
                     preferred_element_type=jnp.float32)           # (Bt, C, HWp) f32

    gamma = gamma_ref[0].astype(jnp.float32)
    o_ref[...] = (gamma * out + x).astype(o_ref.dtype)


def _per_batch_block_bytes(C, HWp):
    # f32 x block in + out (double-buffered by the pipeline) + ~3x (C,C) f32 temporaries.
    return C * HWp * 4 * 4 + C * C * 4 * 3


def _choose_batch_tile(B, C, HWp, budget_bytes=24 << 20):
    per_b = _per_batch_block_bytes(C, HWp)
    bt = 1
    for cand in range(1, B + 1):
        if B % cand == 0 and cand * per_b <= budget_bytes:
            bt = cand
    return bt


def da_cam_module(x, gamma, *, matmul_dtype=jnp.bfloat16):
    """Channel attention: x (B, C, H, W) f32, gamma (1,) f32 -> (B, C, H, W).

    matmul_dtype=jnp.float32 reproduces the PyTorch module numerics closely;
    jnp.bfloat16 (default) feeds the MXU natively with f32 accumulation.
    """
    B, C, H, W = x.shape
    HW = H * W
    HWp = ((HW + 127) // 128) * 128          # lane-dense last dim (unmasked vst)
    x_flat = x.reshape(B, C, HW)
    if HWp != HW:
        # Zero padding is exact: padded columns contribute 0 to energy and the
        # corresponding output columns are sliced off below.
        x_flat = jnp.pad(x_flat, ((0, 0), (0, 0), (0, HWp - HW)))

    Bt = _choose_batch_tile(B, C, HWp)
    use_f32 = np.dtype(matmul_dtype) == np.dtype(np.float32)
    kernel = functools.partial(
        _cam_kernel,
        matmul_dtype=np.dtype(matmul_dtype),
        approx_recip=not use_f32,
    )

    # Raise the scoped-VMEM limit only when blocks outgrow the chip defaults.
    est_bytes = Bt * _per_batch_block_bytes(C, HWp) + (2 << 20)
    vmem_limit = None
    if est_bytes > (30 << 20):
        vmem_limit = min(est_bytes + (8 << 20), 100 << 20)
    # TODO(synk): for very large C*HW (v7x, 64 MiB VMEM) tile the HW axis with an
    # "arbitrary" reduction grid dim accumulating energy into a (C, C) scratch.

    out_flat = pl.pallas_call(
        kernel,
        out_shape=jax.ShapeDtypeStruct((B, C, HWp), x.dtype),
        grid_spec=pltpu.PrefetchScalarGridSpec(
            num_scalar_prefetch=0,
            grid=(B // Bt,),
            in_specs=[
                pl.BlockSpec(memory_space=pltpu.SMEM),                # gamma
                pl.BlockSpec((Bt, C, HWp), lambda b: (b, 0, 0)),      # x
            ],
            out_specs=pl.BlockSpec((Bt, C, HWp), lambda b: (b, 0, 0)),
        ),
        compiler_params=pltpu.CompilerParams(
            dimension_semantics=("parallel",),
            vmem_limit_bytes=vmem_limit,
        ),
    )(gamma, x_flat)

    if HWp != HW:
        out_flat = out_flat[:, :, :HW]
    return out_flat.reshape(B, C, H, W)


def da_cam_reference(x, gamma, matmul_dtype=jnp.float32):
    """Pure-JAX reference mirroring the PyTorch forward (optionally with bf16 operands)."""
    B, C, H, W = x.shape
    xf = x.reshape(B, C, H * W).astype(jnp.float32)
    xm = xf.astype(matmul_dtype)
    energy = jnp.einsum("bcn,bdn->bcd", xm, xm,
                        preferred_element_type=jnp.float32)
    energy_new = jnp.max(energy, axis=-1, keepdims=True) - energy
    attention = jax.nn.softmax(energy_new, axis=-1)
    out = jnp.einsum("bcd,bdn->bcn", attention.astype(matmul_dtype), xm,
                     preferred_element_type=jnp.float32)
    out = out.reshape(B, C, H, W)
    return gamma[0] * out + x


if __name__ == "__main__":
    key = jax.random.PRNGKey(0)
    B, C, H, W = 2, 8, 16, 16
    x = jax.random.normal(key, (B, C, H, W), dtype=jnp.float32)
    # nn.Parameter(torch.zeros(1)) in the module; use a nonzero deterministic
    # value so the attention path is actually exercised.
    gamma = jnp.array([0.5], dtype=jnp.float32)

    # Exact-precision path (f32 MXU operands): matches the module tightly.
    out_f32 = jax.block_until_ready(da_cam_module(x, gamma, matmul_dtype=jnp.float32))
    ref_f32 = da_cam_reference(x, gamma)
    assert out_f32.shape == (B, C, H, W)
    assert jnp.allclose(out_f32, ref_f32, atol=1e-4, rtol=1e-4), "f32 path mismatch"

    # Production path (bf16 MXU operands, f32 accumulation, approx reciprocal):
    # compare against a reference that quantizes the matmul operands identically.
    out_bf16 = jax.block_until_ready(da_cam_module(x, gamma))
    ref_bf16 = da_cam_reference(x, gamma, matmul_dtype=jnp.bfloat16)
    assert out_bf16.shape == (B, C, H, W)
    assert jnp.allclose(out_bf16, ref_bf16, atol=2e-2, rtol=2e-2), "bf16 path mismatch"

    print("KERNEL_OK")
</pallas_src>

<mosaic_0001>
module attributes {stable_mosaic.version = 11 : i64} {
  func.func @_cam_kernel(%arg0: i32, %arg1: memref<1xf32, #tpu.memory_space<smem>>, %arg2: memref<2x8x256xf32, #tpu.memory_space<vmem>>, %arg3: memref<2x8x256xf32, #tpu.memory_space<vmem>>) attributes {dimension_semantics = [#tpu.dimension_semantics<parallel>], iteration_bounds = array<i64: 1>, scalar_prefetch = 0 : i64, scratch_operands = 0 : i64, tpu.core_type = #tpu.core_type<tc>, window_params = [{transform_indices = @transform_0, window_bounds = array<i64: 1>}, {transform_indices = @transform_1, window_bounds = array<i64: 2, 8, 256>}, {transform_indices = @transform_2, window_bounds = array<i64: 2, 8, 256>}]} {
    %c0 = arith.constant 0 : index
    %c0_0 = arith.constant 0 : index
    %c0_1 = arith.constant 0 : index
    %0 = vector.load %arg2[%c0, %c0_0, %c0_1] : memref<2x8x256xf32, #tpu.memory_space<vmem>>, vector<2x8x256xf32>
    "tpu.trace_start"() <{level = 10 : i32, message = "bcn,bdn->bcd"}> : () -> ()
    %cst = arith.constant dense<0.000000e+00> : vector<2x8x8xf32>
    %1 = tpu.matmul %0, %0, %cst {dimension_numbers = #tpu.dot_dimension_numbers<[2], [2], [1], [1], [0, 0, 0, 1, 1, 1], [0], [0]>} : vector<2x8x256xf32>, vector<2x8x256xf32>, vector<2x8x8xf32> -> vector<2x8x8xf32>
    "tpu.trace_stop"() : () -> ()
    %cst_2 = arith.constant dense<0x7F800000> : vector<2x8xf32>
    %2 = vector.multi_reduction <minimumf>, %1, %cst_2 [2] : vector<2x8x8xf32> to vector<2x8xf32>
    %3 = vector.shape_cast %2 : vector<2x8xf32> to vector<2x8x1xf32>
    %4 = vector.broadcast %3 : vector<2x8x1xf32> to vector<2x8x8xf32>
    %5 = arith.subf %4, %1 : vector<2x8x8xf32>
    %6 = math.exp %5 : vector<2x8x8xf32>
    %cst_3 = arith.constant dense<0.000000e+00> : vector<2x8xf32>
    %7 = vector.multi_reduction <add>, %6, %cst_3 [2] : vector<2x8x8xf32> to vector<2x8xf32>
    %8 = vector.shape_cast %7 : vector<2x8xf32> to vector<2x8x1xf32>
    %9 = tpu.reciprocal %8 : vector<2x8x1xf32> -> vector<2x8x1xf32>
    %10 = vector.broadcast %9 : vector<2x8x1xf32> to vector<2x8x8xf32>
    %11 = arith.mulf %6, %10 : vector<2x8x8xf32>
    "tpu.trace_start"() <{level = 10 : i32, message = "bcd,bdn->bcn"}> : () -> ()
    %cst_4 = arith.constant dense<0.000000e+00> : vector<2x8x256xf32>
    %12 = tpu.matmul %11, %0, %cst_4 {dimension_numbers = #tpu.dot_dimension_numbers<[2], [1], [1], [2], [0, 0, 0, 1, 1, 2], [0], [0]>} : vector<2x8x8xf32>, vector<2x8x256xf32>, vector<2x8x256xf32> -> vector<2x8x256xf32>
    "tpu.trace_stop"() : () -> ()
    %c0_5 = arith.constant 0 : index
    %13 = memref.load %arg1[%c0_5] : memref<1xf32, #tpu.memory_space<smem>>
    %14 = vector.broadcast %13 : f32 to vector<2x8x256xf32>
    %15 = arith.mulf %14, %12 : vector<2x8x256xf32>
    %16 = arith.addf %15, %0 : vector<2x8x256xf32>
    %c0_6 = arith.constant 0 : index
    %c0_7 = arith.constant 0 : index
    %c0_8 = arith.constant 0 : index
    %17 = vector.load %arg3[%c0_6, %c0_7, %c0_8] : memref<2x8x256xf32, #tpu.memory_space<vmem>>, vector<2x8x256xf32>
    tpu.vector_store %arg3[%c0_6, %c0_7, %c0_8], %16 {strides = array<i32>} : memref<2x8x256xf32, #tpu.memory_space<vmem>>, vector<2x8x256xf32>,
    return
  }
  func.func @transform_0(%arg0: i32) -> i32 {
    %c0_i32 = arith.constant 0 : i32
    %c0_i32_0 = arith.constant 0 : i32
    return %c0_i32 : i32
  }
  func.func @transform_1(%arg0: i32) -> (i32, i32, i32) {
    %c0_i32 = arith.constant 0 : i32
    %c0_i32_0 = arith.constant 0 : i32
    %c0_i32_1 = arith.constant 0 : i32
    return %arg0, %c0_i32, %c0_i32_0 : i32, i32, i32
  }
  func.func @transform_2(%arg0: i32) -> (i32, i32, i32) {
    %c0_i32 = arith.constant 0 : i32
    %c0_i32_0 = arith.constant 0 : i32
    %c0_i32_1 = arith.constant 0 : i32
    return %arg0, %c0_i32, %c0_i32_0 : i32, i32, i32
  }
}

</mosaic_0001>

<bundles_post_ra>
// kernel: tpu_custom_call.1
= control target key start
LH: loop header
LB: loop body
LE: loop exit
PB: predicated region body
PF: predicated region fallthrough
CT: control target
= control target key end

     0   :  { %8 = vsyncpa [#allocation4], 0  ;;  %s501_s0 = inlined_call_operand.<no memory space> [shape: f32[1], index: 0, kind: input, shape index: {}]   ;;  %s502_s1 = inlined_call_operand.hbm [shape: f32[2,8,256], index: 1, kind: input, shape index: {}]   ;;  %s503_s2 = inlined_call_operand.hbm [shape: f32[2,8,256], index: 2, kind: output, shape index: {}]  }
   0x1   :  { %9 = vsyncpa [#allocation5], 0  ;;  %s436_s9 = smov [#allocation3]   ;;  %s388_s13 = scalar_lea.hbm %s502_s1, 512 }
   0x2   :  { %s17_s10 = sshll.u32 %s436_s9, 4  ;;  %p389_p0 = scmp.ne.s32.totalorder %s502_s1, %s388_s13  ;;  %s18_s10 = int_to_ptr.vmem [resolvable:$true] %s17_s10 }
   0x3   :  { %p392_p1 = scmp.lt.u32.totalorder %s388_s13, %s502_s1 }
   0x5   :  { %p394_p2 = pnand %p392_p1, %p389_p0 }
   0x7   :  { %397 = shalt.err (!%p394_p2)
}
   0x8   :  { %s398_s18 = scalar_lea.vmem %s18_s10, 512  ;;  %p403_p4 = scmp.lt.s32.totalorder %s18_s10, %s18_s10 }
   0x9   :  { %p399_p3 = scmp.ne.s32.totalorder %s18_s10, %s398_s18  ;;  %p404_p5 = scmp.lt.s32.totalorder %s398_s18, %s398_s18 }
   0xb   :  { %p405_p6 = por %p404_p5, %p403_p4 }
   0xd   :  { %p406_p7 = pnand %p405_p6, %p399_p3 }
   0xf   :  { %409 = shalt.err (!%p406_p7)
}
  0x10   :  { %s437_s19 = smov 256   ;;  %s438_s20 = smov 16  }
  0x11   :  { %23 = dma.hbm_to_vmem [thread:$0]  %s502_s1, 512, %s18_s10, [#allocation4], %s437_s19, %s437_s19, %s438_s20  }
  0x12   :  { %432 = dma.done.wait [#allocation4], 512  }
  0x13   :  { %433 = vsyncadd [#allocation4], 4294966784  ;;  %v28_v0 = vld [vmem:[#allocation3 + $0x8] sm:$0xff]  ;;  %v27_v1 = vld [vmem:[#allocation3] sm:$0xff]  ;;  %vm171_vm0 = vcmask 64512   ;;  %v439_v20 = vmov 0.0   ;;  %v343_v27 = vstv %s501_s0 }
  0x14   :  { %v471_v2 = vld [vmem:[#allocation3 + $0x18] sm:$0xff]  ;;  %31 = vmatprep.subr.mxu0 %v28_v0  ;;  %95 = vmatprep.mubr.f32.mxu0 %v28_v0  ;;  %v29_v3 = vld [vmem:[#allocation3 + $0x10] sm:$0xff]  ;;  %s440_s24 = smov [#allocation6]  }
  0x15   :  { %32 = vmatpush1.xpose.msra.mxu0 %v27_v1  ;;  %101 = vmatprep.subr.mxu1 %v471_v2  ;;  %s361_s25 = sshll.u32 %s440_s24, 4  ;;  %s362_s25 = int_to_ptr.vmem [resolvable:$true] %s361_s25 }
  0x16   :  { %102 = vmatpush1.xpose.msra.mxu1 %v29_v3  ;;  %165 = vmatprep.mubr.f32.mxu1 %v471_v2  ;;  %s410_s0 = scalar_lea.vmem %s362_s25, 512  ;;  %p415_p9 = scmp.lt.s32.totalorder %s362_s25, %s362_s25 }
  0x17   :  { %197 = vmatprep.subr.mxu0 %v28_v0  ;;  %271 = vmatprep.subr.mxu1 %v471_v2  ;;  %p411_p8 = scmp.ne.s32.totalorder %s362_s25, %s410_s0  ;;  %p416_p10 = scmp.lt.s32.totalorder %s410_s0, %s410_s0 }
  0x18   :  { %96 = vmatmul.mubr.f32.vlgmr.msra.gmra.mrb[0].mxu0 %v27_v1 }
  0x19   :  { %166 = vmatmul.mubr.f32.vlgmr.msra.gmra.mrb[0].mxu1 %v29_v3  ;;  %198 = vmatpush1.msra.mxu0 %v27_v1  ;;  %p417_p11 = por %p416_p10, %p415_p9 }
  0x1a   :  { %272 = vmatpush1.msra.mxu1 %v29_v3  ;;  %261 = vmatprep.mubr.f32.mxu0 %v439_v20 }
  0x1b   :  { %335 = vmatprep.mubr.f32.mxu1 %v439_v20  ;;  %p418_p12 = pnand %p417_p11, %p411_p8 }
  0xeb   :  { %v97_v4 = vpop.f32.mrb[0].mxu0 }
  0xec   :  { %v99_v5 = vpop.f32.mrb[1].mxu0  ;;  %v172_v6 = vsel %vm171_vm0, %v97_v4, inf  ;;  %v167_v7 = vpop.f32.mrb[0].mxu1 }
  0xed   :  { %173 = vmin.xlane.f32.xlu0 %v172_v6  ;;  %v169_v8 = vpop.f32.mrb[1].mxu1  ;;  %v175_v9 = vsel %vm171_vm0, %v167_v7, inf }
  0xf1   :  { %176 = vmin.xlane.f32.xlu0 %v175_v9 }
 0x17a   :  { %v174_v10 = vpop.xlane.xlu0 %173 }
 0x17b   :  { %v178_v11 = vsub.f32 %v174_v10, %v97_v4 }
 0x17d   :  { %v180_v12 = vmul.f32 1.442695, %v178_v11 }
 0x17e   :  { %v177_v13 = vpop.xlane.xlu0 %176 }
 0x17f   :  { %380 = vpow2.f32 %v180_v12  ;;  %v179_v14 = vsub.f32 %v177_v13, %v167_v7 }
 0x181   :  { %v182_v15 = vmul.f32 1.442695, %v179_v14 }
 0x183   :  { %382 = vpow2.f32 %v182_v15 }
 0x189   :  { %v381_v16 = vpop.eup %380 }
 0x18a   :  { %v184_v17 = vsel %vm171_vm0, %v381_v16, 0.0 }
 0x18b   :  { %185 = vadd.xlane.f32.xlu1 %v184_v17 }
 0x18d   :  { %v383_v18 = vpop.eup %382 }
 0x18e   :  { %v187_v19 = vsel %vm171_vm0, %v383_v18, 0.0 }
 0x18f   :  { %188 = vadd.xlane.f32.xlu1 %v187_v19 }
 0x218   :  { %v186_v21 = vpop.xlane.xlu1 %185 }
 0x219   :  { %384 = vrcp.f32 %v186_v21 }
 0x21c   :  { %v189_v22 = vpop.xlane.xlu1 %188 }
 0x21d   :  { %386 = vrcp.f32 %v189_v22 }
 0x223   :  { %v385_v23 = vpop.eup %384 }
 0x224   :  { %v192_v24 = vmul.f32 %v385_v23, %v381_v16 }
 0x226   :  { %373 = vmatmul.mubr.msk.f32.vlgmr.msra.gmra.mrb[2].mxu0 %vm171_vm0, %v192_v24 }
 0x227   :  { %v387_v25 = vpop.eup %386 }
 0x228   :  { %v193_v26 = vmul.f32 %v387_v25, %v383_v18 }
 0x22a   :  { %374 = vmatmul.mubr.msk.f32.vlgmr.msra.gmra.mrb[2].mxu1 %vm171_vm0, %v193_v26 }
 0x2f9   :  { %v263_v28 = vpop.f32.mrb[2].mxu0 }
 0x2fa   :  { %v344_v29 = vmul.f32 %v343_v27, %v263_v28  ;;  %v265_v30 = vpop.f32.mrb[3].mxu0 }
 0x2fb   :  { %v345_v31 = vmul.f32 %v343_v27, %v265_v30 }
 0x2fc   :  { %v348_v32 = vadd.f32 %v344_v29, %v27_v1 }
 0x2fd   :  { %v349_v33 = vadd.f32 %v345_v31, %v28_v0  ;;  %v337_v34 = vpop.f32.mrb[2].mxu1 }
 0x2fe   :  { %352 = vst [vmem:[#allocation6] sm:$0xff] %v348_v32  ;;  %v346_v35 = vmul.f32 %v343_v27, %v337_v34  ;;  %v339_v36 = vpop.f32.mrb[3].mxu1 }
 0x2ff   :  { %353 = vst [vmem:[#allocation6 + $0x8] sm:$0xff] %v349_v33  ;;  %v347_v37 = vmul.f32 %v343_v27, %v339_v36 }
 0x300   :  { %v350_v38 = vadd.f32 %v346_v35, %v29_v3 }
 0x301   :  { %v351_v39 = vadd.f32 %v347_v37, %v471_v2 }
 0x302   :  { %354 = vst [vmem:[#allocation6 + $0x10] sm:$0xff] %v350_v38 }
 0x303   :  { %355 = vst [vmem:[#allocation6 + $0x18] sm:$0xff] %v351_v39 }
 0x304   :  { %421 = shalt.err (!%p418_p12)
}
 0x305   :  { %s422_s28 = scalar_lea.hbm %s503_s2, 512 }
 0x306   :  { %p423_p13 = scmp.ne.s32.totalorder %s503_s2, %s422_s28  ;;  %p426_p0 = scmp.lt.u32.totalorder %s422_s28, %s503_s2 }
 0x308   :  { %p428_p1 = pnand %p426_p0, %p423_p13 }
 0x30a   :  { %431 = shalt.err (!%p428_p1)
}
 0x30b   :  { %367 = dma.vmem_to_hbm [thread:$0]  %s362_s25, 512, %s503_s2, [#allocation5], %s437_s19, %s437_s19, %s438_s20  }
 0x30c   :  { %434 = dma.done.wait [#allocation5], 512  }
 0x30d   :  { %435 = vsyncadd [#allocation5], 4294966784 }
 0x30e   :  { %371 = vsyncpa [#allocation4], 1 }
 0x30f   :  { %372 = vsyncpa [#allocation5], 1 }

</bundles_post_ra>
